<compile_context>
chip_gen: v6e
topology: v6e:2x2x1
jax: 0.10.0
libtpu: 0.0.40
codegen_flags: <defaults>
</compile_context>

<pallas_src>
import jax
import jax.numpy as jnp
from jax.experimental import pallas as pl
from jax.experimental.pallas import tpu as pltpu


def _actor_kernel(x_ref, w1_ref, b1_ref, w2_ref, b2_ref, w3_ref, b3_ref, o_ref):
    # x_ref: [bt, state_size] f32. Cast to bf16 in-kernel (halves x HBM traffic
    # vs a wrapper-side cast pass; the cast itself hides under the MXU).
    x = x_ref[...].astype(jnp.bfloat16)

    # Layer 1 / 2: Linear + Tanh. bf16 MXU with f32 accumulate; bias add in f32,
    # tanh on the bf16-rounded pre-activation; h1/h2 stay bf16 end-to-end.
    h1 = jnp.tanh(
        (jnp.dot(x, w1_ref[...], preferred_element_type=jnp.float32)
         + b1_ref[...]).astype(jnp.bfloat16))
    h2 = jnp.tanh(
        (jnp.dot(h1, w2_ref[...], preferred_element_type=jnp.float32)
         + b2_ref[...]).astype(jnp.bfloat16))

    # Layer 3: Linear(hidsize, a_pad). Padded lanes carry bias = -1e30 (f32),
    # so after the softmax their probability is exactly 0 (no runtime mask).
    logits = (jnp.dot(h2, w3_ref[...], preferred_element_type=jnp.float32)
              + b3_ref[...])

    # Numerically-stable softmax over the lane axis (f32, exact reciprocal so
    # the probabilities are suitable for PPO log-prob ratios).
    m = jnp.max(logits, axis=-1, keepdims=True)
    e = jnp.exp(logits - m)
    s = jnp.sum(e, axis=-1, keepdims=True)
    o_ref[...] = (e * pl.reciprocal(s)).astype(o_ref.dtype)


def _round_up(n, m):
    return ((n + m - 1) // m) * m


def actor_forward(x, params, action_size, *, block_b=512):
    """x: [B, state_size] float32. Returns softmax probs [B, action_size] f32."""
    w1, b1, w2, b2, w3p, b3p = params
    B, state_size = x.shape
    hid = w1.shape[1]
    a_pad = w3p.shape[1]

    # Batch tiling: single grid step for B <= block_b (no padding, no partial
    # block, per-step overhead paid once); otherwise tiles of block_b rows
    # (rounded to a multiple of 16 for bf16 sublane packing) with a partial
    # last block whose out-of-bounds rows Pallas discards on store.
    if B <= block_b:
        bt = B          # block equals full batch dim -> always a legal block
        nb = 1
    else:
        bt = _round_up(block_b, 16)
        nb = pl.cdiv(B, bt)

    # Weight/bias blocks pinned VMEM-resident across the whole grid.
    # (pl.Buffered(1) on these would save one redundant buffer; skipped - the
    #  ~0.5 MB involved is negligible even against v7x's 64 MiB VMEM.)
    pinned = lambda shape: pl.BlockSpec(shape, lambda i: (0, 0))

    grid_spec = pl.GridSpec(
        grid=(nb,),
        in_specs=[
            pl.BlockSpec((bt, state_size), lambda i: (i, 0)),  # x tile walks batch
            pinned(w1.shape), pinned(b1.shape),                # weights stay resident
            pinned(w2.shape), pinned(b2.shape),
            pinned(w3p.shape), pinned(b3p.shape),
        ],
        out_specs=pl.BlockSpec((bt, a_pad), lambda i: (i, 0)),  # lane-dense 128-wide
    )

    flops = 2 * B * (state_size * hid + hid * hid + hid * a_pad)
    transcendentals = B * (2 * hid + a_pad)                     # tanh + exp
    bytes_accessed = (
        4 * B * state_size + 4 * B * a_pad                      # f32 x in, probs out
        + 2 * (state_size * hid + hid * hid + hid * a_pad)      # bf16 weights
        + 4 * (hid + hid + a_pad))                              # f32 biases

    probs_padded = pl.pallas_call(
        _actor_kernel,
        out_shape=jax.ShapeDtypeStruct((B, a_pad), jnp.float32),
        grid_spec=grid_spec,
        compiler_params=pltpu.CompilerParams(
            dimension_semantics=("parallel",)),   # batch splits across TCs on v7x
        cost_estimate=pl.CostEstimate(
            flops=flops,
            transcendentals=transcendentals,
            bytes_accessed=bytes_accessed),
    )(x, w1, b1, w2, b2, w3p, b3p)

    # TODO(synk): downstream Categorical sampling / log-prob could be fused here
    # to avoid this separate slice pass over the padded array.
    return probs_padded[:, :action_size]


def init_actor_params(key, state_size, hidsize, action_size, a_pad=128):
    """torch.nn.Linear-style init (U[-1/sqrt(fan_in), 1/sqrt(fan_in)]).

    Returns (kernel_params, reference_params):
      kernel_params: bf16 weights [in, out], f32 biases [1, out]; layer-3 weight
        zero-padded and bias padded with -1e30 on the lane axis to a_pad.
        NOTE: b3p must stay f32 (the -1e30 pad + real-lane bias precision).
      reference_params: unpadded f32 weights/biases for the pure-JAX reference.
    """
    ks = jax.random.split(key, 6)

    def lin(kw, kb, fan_in, fan_out):
        bound = float(fan_in) ** -0.5
        w = jax.random.uniform(kw, (fan_in, fan_out), jnp.float32, -bound, bound)
        b = jax.random.uniform(kb, (1, fan_out), jnp.float32, -bound, bound)
        return w, b

    w1, b1 = lin(ks[0], ks[1], state_size, hidsize)
    w2, b2 = lin(ks[2], ks[3], hidsize, hidsize)
    w3, b3 = lin(ks[4], ks[5], hidsize, action_size)

    w3p = jnp.zeros((hidsize, a_pad), jnp.float32).at[:, :action_size].set(w3)
    b3p = jnp.full((1, a_pad), -1e30, jnp.float32).at[:, :action_size].set(b3)

    kernel_params = (
        w1.astype(jnp.bfloat16), b1,
        w2.astype(jnp.bfloat16), b2,
        w3p.astype(jnp.bfloat16), b3p,          # b3p stays f32 on purpose
    )
    reference_params = (w1, b1, w2, b2, w3, b3)
    return kernel_params, reference_params


def reference_forward(x, w1, b1, w2, b2, w3, b3):
    """Pure-JAX reference mirroring the kernel's precision choices
    (bf16 matmul inputs, f32 accumulate, tanh on bf16-rounded pre-activation)."""
    bf = jnp.bfloat16
    z1 = jnp.dot(x.astype(bf), w1.astype(bf),
                 preferred_element_type=jnp.float32) + b1
    h1 = jnp.tanh(z1.astype(bf))
    z2 = jnp.dot(h1, w2.astype(bf),
                 preferred_element_type=jnp.float32) + b2
    h2 = jnp.tanh(z2.astype(bf))
    logits = jnp.dot(h2, w3.astype(bf),
                     preferred_element_type=jnp.float32) + b3
    return jax.nn.softmax(logits, axis=-1)


if __name__ == "__main__":
    # Small shapes consistent with the module: flatland action space = 5,
    # hidsize = 256 (module default), 128-aligned observation size.
    B = 40
    STATE_SIZE = 128
    HIDSIZE = 256
    ACTION_SIZE = 5

    key = jax.random.PRNGKey(0)
    k_x, k_p = jax.random.split(key)

    x = jax.random.normal(k_x, (B, STATE_SIZE), jnp.float32)
    kparams, rparams = init_actor_params(k_p, STATE_SIZE, HIDSIZE, ACTION_SIZE)
    ref = reference_forward(x, *rparams)

    # Path 1: single grid step (B <= block_b) - no padding, no partial blocks.
    probs = jax.block_until_ready(actor_forward(x, kparams, ACTION_SIZE))
    assert probs.shape == (B, ACTION_SIZE)
    assert bool(jnp.all(jnp.isfinite(probs)))
    assert jnp.allclose(probs, ref, atol=1e-2, rtol=1e-2), \
        float(jnp.max(jnp.abs(probs - ref)))
    assert jnp.allclose(jnp.sum(probs, axis=-1), 1.0, atol=1e-3)

    # Path 2: multi-step batch grid with a partial last block (3 steps: 16+16+8)
    # to exercise the pipelined / megacore path.
    probs2 = jax.block_until_ready(actor_forward(x, kparams, ACTION_SIZE, block_b=16))
    assert probs2.shape == (B, ACTION_SIZE)
    assert jnp.allclose(probs2, ref, atol=1e-2, rtol=1e-2), \
        float(jnp.max(jnp.abs(probs2 - ref)))

    print("KERNEL_OK")
</pallas_src>

<mosaic_0001>
module attributes {stable_mosaic.version = 11 : i64} {
  func.func @_actor_kernel(%arg0: i32, %arg1: memref<40x128xf32, #tpu.memory_space<vmem>>, %arg2: memref<128x256xbf16, #tpu.memory_space<vmem>>, %arg3: memref<1x256xf32, #tpu.memory_space<vmem>>, %arg4: memref<256x256xbf16, #tpu.memory_space<vmem>>, %arg5: memref<1x256xf32, #tpu.memory_space<vmem>>, %arg6: memref<256x128xbf16, #tpu.memory_space<vmem>>, %arg7: memref<1x128xf32, #tpu.memory_space<vmem>>, %arg8: memref<40x128xf32, #tpu.memory_space<vmem>>) attributes {dimension_semantics = [#tpu.dimension_semantics<parallel>], iteration_bounds = array<i64: 1>, scalar_prefetch = 0 : i64, scratch_operands = 0 : i64, tpu.core_type = #tpu.core_type<tc>, window_params = [{transform_indices = @transform_0, window_bounds = array<i64: 40, 128>}, {pipeline_mode = #tpu.pipeline_mode<synchronous>, transform_indices = @transform_1, window_bounds = array<i64: 128, 256>}, {pipeline_mode = #tpu.pipeline_mode<synchronous>, transform_indices = @transform_2, window_bounds = array<i64: 1, 256>}, {pipeline_mode = #tpu.pipeline_mode<synchronous>, transform_indices = @transform_3, window_bounds = array<i64: 256, 256>}, {pipeline_mode = #tpu.pipeline_mode<synchronous>, transform_indices = @transform_4, window_bounds = array<i64: 1, 256>}, {pipeline_mode = #tpu.pipeline_mode<synchronous>, transform_indices = @transform_5, window_bounds = array<i64: 256, 128>}, {pipeline_mode = #tpu.pipeline_mode<synchronous>, transform_indices = @transform_6, window_bounds = array<i64: 1, 128>}, {transform_indices = @transform_7, window_bounds = array<i64: 40, 128>}]} {
    %c0 = arith.constant 0 : index
    %c0_0 = arith.constant 0 : index
    %0 = vector.load %arg1[%c0, %c0_0] : memref<40x128xf32, #tpu.memory_space<vmem>>, vector<40x128xf32>
    %1 = arith.truncf %0 : vector<40x128xf32> to vector<40x128xbf16>
    %c0_1 = arith.constant 0 : index
    %c0_2 = arith.constant 0 : index
    %2 = vector.load %arg2[%c0_1, %c0_2] : memref<128x256xbf16, #tpu.memory_space<vmem>>, vector<128x256xbf16>
    %cst = arith.constant dense<0.000000e+00> : vector<40x256xf32>
    %3 = tpu.matmul %1, %2, %cst {dimension_numbers = #tpu.dot_dimension_numbers<[1], [0], [0], [1], [0, 0, 1, 1], [], []>} : vector<40x128xbf16>, vector<128x256xbf16>, vector<40x256xf32> -> vector<40x256xf32>
    %c0_3 = arith.constant 0 : index
    %c0_4 = arith.constant 0 : index
    %4 = vector.load %arg3[%c0_3, %c0_4] : memref<1x256xf32, #tpu.memory_space<vmem>>, vector<1x256xf32>
    %5 = vector.broadcast %4 : vector<1x256xf32> to vector<40x256xf32>
    %6 = arith.addf %3, %5 : vector<40x256xf32>
    %7 = arith.truncf %6 : vector<40x256xf32> to vector<40x256xbf16>
    %8 = math.tanh %7 : vector<40x256xbf16>
    %c0_5 = arith.constant 0 : index
    %c0_6 = arith.constant 0 : index
    %9 = vector.load %arg4[%c0_5, %c0_6] : memref<256x256xbf16, #tpu.memory_space<vmem>>, vector<256x256xbf16>
    %cst_7 = arith.constant dense<0.000000e+00> : vector<40x256xf32>
    %10 = tpu.matmul %8, %9, %cst_7 {dimension_numbers = #tpu.dot_dimension_numbers<[1], [0], [0], [1], [0, 0, 1, 1], [], []>} : vector<40x256xbf16>, vector<256x256xbf16>, vector<40x256xf32> -> vector<40x256xf32>
    %c0_8 = arith.constant 0 : index
    %c0_9 = arith.constant 0 : index
    %11 = vector.load %arg5[%c0_8, %c0_9] : memref<1x256xf32, #tpu.memory_space<vmem>>, vector<1x256xf32>
    %12 = vector.broadcast %11 : vector<1x256xf32> to vector<40x256xf32>
    %13 = arith.addf %10, %12 : vector<40x256xf32>
    %14 = arith.truncf %13 : vector<40x256xf32> to vector<40x256xbf16>
    %15 = math.tanh %14 : vector<40x256xbf16>
    %c0_10 = arith.constant 0 : index
    %c0_11 = arith.constant 0 : index
    %16 = vector.load %arg6[%c0_10, %c0_11] : memref<256x128xbf16, #tpu.memory_space<vmem>>, vector<256x128xbf16>
    %cst_12 = arith.constant dense<0.000000e+00> : vector<40x128xf32>
    %17 = tpu.matmul %15, %16, %cst_12 {dimension_numbers = #tpu.dot_dimension_numbers<[1], [0], [0], [1], [0, 0, 1, 1], [], []>} : vector<40x256xbf16>, vector<256x128xbf16>, vector<40x128xf32> -> vector<40x128xf32>
    %c0_13 = arith.constant 0 : index
    %c0_14 = arith.constant 0 : index
    %18 = vector.load %arg7[%c0_13, %c0_14] : memref<1x128xf32, #tpu.memory_space<vmem>>, vector<1x128xf32>
    %19 = vector.broadcast %18 : vector<1x128xf32> to vector<40x128xf32>
    %20 = arith.addf %17, %19 : vector<40x128xf32>
    %cst_15 = arith.constant dense<0xFF800000> : vector<40xf32>
    %21 = vector.multi_reduction <maximumf>, %20, %cst_15 [1] : vector<40x128xf32> to vector<40xf32>
    %22 = vector.shape_cast %21 : vector<40xf32> to vector<40x1xf32>
    %23 = vector.broadcast %22 : vector<40x1xf32> to vector<40x128xf32>
    %24 = arith.subf %20, %23 : vector<40x128xf32>
    %25 = math.exp %24 : vector<40x128xf32>
    %cst_16 = arith.constant dense<0.000000e+00> : vector<40xf32>
    %26 = vector.multi_reduction <add>, %25, %cst_16 [1] : vector<40x128xf32> to vector<40xf32>
    %27 = vector.shape_cast %26 : vector<40xf32> to vector<40x1xf32>
    %28 = tpu.reciprocal %27 : vector<40x1xf32> -> vector<40x1xf32>
    %29 = vector.broadcast %28 : vector<40x1xf32> to vector<40x128xf32>
    %30 = arith.mulf %25, %29 : vector<40x128xf32>
    %c0_17 = arith.constant 0 : index
    %c0_18 = arith.constant 0 : index
    %31 = vector.load %arg8[%c0_17, %c0_18] : memref<40x128xf32, #tpu.memory_space<vmem>>, vector<40x128xf32>
    tpu.vector_store %arg8[%c0_17, %c0_18], %30 {strides = array<i32>} : memref<40x128xf32, #tpu.memory_space<vmem>>, vector<40x128xf32>,
    return
  }
  func.func @transform_0(%arg0: i32) -> (i32, i32) {
    %c0_i32 = arith.constant 0 : i32
    %c0_i32_0 = arith.constant 0 : i32
    return %arg0, %c0_i32 : i32, i32
  }
  func.func @transform_1(%arg0: i32) -> (i32, i32) {
    %c0_i32 = arith.constant 0 : i32
    %c0_i32_0 = arith.constant 0 : i32
    %c0_i32_1 = arith.constant 0 : i32
    return %c0_i32, %c0_i32_0 : i32, i32
  }
  func.func @transform_2(%arg0: i32) -> (i32, i32) {
    %c0_i32 = arith.constant 0 : i32
    %c0_i32_0 = arith.constant 0 : i32
    %c0_i32_1 = arith.constant 0 : i32
    return %c0_i32, %c0_i32_0 : i32, i32
  }
  func.func @transform_3(%arg0: i32) -> (i32, i32) {
    %c0_i32 = arith.constant 0 : i32
    %c0_i32_0 = arith.constant 0 : i32
    %c0_i32_1 = arith.constant 0 : i32
    return %c0_i32, %c0_i32_0 : i32, i32
  }
  func.func @transform_4(%arg0: i32) -> (i32, i32) {
    %c0_i32 = arith.constant 0 : i32
    %c0_i32_0 = arith.constant 0 : i32
    %c0_i32_1 = arith.constant 0 : i32
    return %c0_i32, %c0_i32_0 : i32, i32
  }
  func.func @transform_5(%arg0: i32) -> (i32, i32) {
    %c0_i32 = arith.constant 0 : i32
    %c0_i32_0 = arith.constant 0 : i32
    %c0_i32_1 = arith.constant 0 : i32
    return %c0_i32, %c0_i32_0 : i32, i32
  }
  func.func @transform_6(%arg0: i32) -> (i32, i32) {
    %c0_i32 = arith.constant 0 : i32
    %c0_i32_0 = arith.constant 0 : i32
    %c0_i32_1 = arith.constant 0 : i32
    return %c0_i32, %c0_i32_0 : i32, i32
  }
  func.func @transform_7(%arg0: i32) -> (i32, i32) {
    %c0_i32 = arith.constant 0 : i32
    %c0_i32_0 = arith.constant 0 : i32
    return %arg0, %c0_i32 : i32, i32
  }
}

</mosaic_0001>

<bundles_post_ra>
// kernel: tpu_custom_call.1
= control target key start
LH: loop header
LB: loop body
LE: loop exit
PB: predicated region body
PF: predicated region fallthrough
CT: control target
= control target key end

     0   :  { %12 = vsyncpa [#allocation3], 0  ;;  %s1259_s0 = inlined_call_operand.hbm [shape: f32[40,128], index: 0, kind: input, shape index: {}]   ;;  %s1260_s1 = inlined_call_operand.hbm [shape: bf16[128,256], index: 1, kind: input, shape index: {}]   ;;  %s1261_s2 = inlined_call_operand.vmem [shape: f32[1,256], index: 2, kind: input, shape index: {}]   ;;  %s1262_s3 = inlined_call_operand.hbm [shape: bf16[256,256], index: 3, kind: input, shape index: {}]   ;;  %s1263_s4 = inlined_call_operand.vmem [shape: f32[1,256], index: 4, kind: input, shape index: {}]   ;;  %s1264_s5 = inlined_call_operand.hbm [shape: bf16[256,128], index: 5, kind: input, shape index: {}]   ;;  %s1265_s6 = inlined_call_operand.vmem [shape: f32[1,128], index: 6, kind: input, shape index: {}]   ;;  %s1266_s7 = inlined_call_operand.hbm [shape: f32[40,128], index: 7, kind: output, shape index: {}]  }
   0x1   :  { %13 = vsyncpa [#allocation6], 0 }
   0x2   :  { %14 = vsyncpa [#allocation9], 0 }
   0x3   :  { %15 = vsyncpa [#allocation4], 0  ;;  %s1158_s24 = smov [#allocation5]   ;;  %s1159_s26 = smov [#allocation2]  }
   0x4   :  { %s33_s25 = sshll.u32 %s1158_s24, 4  ;;  %s21_s27 = sshll.u32 %s1159_s26, 4  ;;  %s34_s25 = int_to_ptr.vmem [resolvable:$true] %s33_s25  ;;  %s22_s27 = int_to_ptr.vmem [resolvable:$true] %s21_s27 }
   0x5   :  { %s1058_s28 = scalar_lea.vmem %s34_s25, 2048  ;;  %p1063_p1 = scmp.lt.s32.totalorder %s34_s25, %s34_s25 }
   0x6   :  { %p1059_p0 = scmp.ne.s32.totalorder %s34_s25, %s1058_s28  ;;  %p1064_p2 = scmp.lt.s32.totalorder %s1058_s28, %s1058_s28 }
   0x8   :  { %p1065_p3 = por %p1064_p2, %p1063_p1 }
   0xa   :  { %p1066_p4 = pnand %p1065_p3, %p1059_p0 }
   0xc   :  { %1069 = shalt.err (!%p1066_p4)
}
   0xd   :  { %s1160_s29 = smov 128   ;;  %s1161_s30 = smov 8  }
   0xe   :  { %39 = dma.hbm_to_vmem [thread:$0]  %s1260_s1, 2048, %s34_s25, [#allocation6], %s1160_s29, %s1160_s29, %s1161_s30  }
   0xf   :  { %s1078_s10 = scalar_lea.vmem %s22_s27, 640  ;;  %p1083_p6 = scmp.lt.s32.totalorder %s22_s27, %s22_s27 }
  0x10   :  { %p1079_p5 = scmp.ne.s32.totalorder %s22_s27, %s1078_s10  ;;  %p1084_p7 = scmp.lt.s32.totalorder %s1078_s10, %s1078_s10 }
  0x12   :  { %p1085_p8 = por %p1084_p7, %p1083_p6 }
  0x14   :  { %p1086_p9 = pnand %p1085_p8, %p1079_p5 }
  0x16   :  { %1089 = shalt.err (!%p1086_p9)
}
  0x17   :  { %27 = dma.hbm_to_vmem [thread:$0]  %s1259_s0, 640, %s22_s27, [#allocation3], %s1160_s29, %s1160_s29, %s1161_s30  }
  0x18   :  { %s1162_s13 = smov [#allocation7]   ;;  %s1163_s15 = smov [#allocation8]  }
  0x19   :  { %s47_s14 = sshll.u32 %s1162_s13, 4  ;;  %s61_s16 = sshll.u32 %s1163_s15, 4  ;;  %s48_s14 = int_to_ptr.vmem [resolvable:$true] %s47_s14  ;;  %s62_s16 = int_to_ptr.vmem [resolvable:$true] %s61_s16 }
  0x1a   :  { %s1098_s1 = scalar_lea.vmem %s48_s14, 4096  ;;  %p1103_p11 = scmp.lt.s32.totalorder %s48_s14, %s48_s14 }
  0x1b   :  { %p1099_p10 = scmp.ne.s32.totalorder %s48_s14, %s1098_s1  ;;  %p1104_p12 = scmp.lt.s32.totalorder %s1098_s1, %s1098_s1 }
  0x1d   :  { %p1105_p13 = por %p1104_p12, %p1103_p11 }
  0x1f   :  { %p1106_p0 = pnand %p1105_p13, %p1099_p10 }
  0x21   :  { %1109 = shalt.err (!%p1106_p0)
}
  0x22   :  { %53 = dma.hbm_to_vmem [thread:$0]  %s1262_s3, 4096, %s48_s14, [#allocation6], %s1160_s29, %s1160_s29, %s1161_s30  }
  0x23   :  { %s1118_s0 = scalar_lea.vmem %s62_s16, 2048  ;;  %p1123_p2 = scmp.lt.s32.totalorder %s62_s16, %s62_s16 }
  0x24   :  { %p1119_p1 = scmp.ne.s32.totalorder %s62_s16, %s1118_s0  ;;  %p1124_p3 = scmp.lt.s32.totalorder %s1118_s0, %s1118_s0 }
  0x26   :  { %p1125_p4 = por %p1124_p3, %p1123_p2 }
  0x28   :  { %p1126_p5 = pnand %p1125_p4, %p1119_p1 }
  0x2a   :  { %1129 = shalt.err (!%p1126_p5)
}
  0x2b   :  { %s1164_s19 = smov 64   ;;  %s1165_s20 = smov 4  }
  0x2c   :  { %67 = dma.hbm_to_vmem [thread:$0]  %s1264_s5, 2048, %s62_s16, [#allocation9], %s1164_s19, %s1164_s19, %s1165_s20  }
  0x2d   :  { %1150 = dma.done.wait [#allocation3], 640  }
  0x2e   :  { %1151 = vsyncadd [#allocation3], 4294966656 }
  0x2f   :  { %1152 = dma.done.wait [#allocation6], 6144  }
  0x30   :  { %1153 = vsyncadd [#allocation6], 4294961152 }
  0x31   :  { %1154 = dma.done.wait [#allocation9], 2048  }
  0x32   :  { %1155 = vsyncadd [#allocation9], 4294965248  ;;  %v1166_v0 = vmov 0   ;;  %v918_v1 = vld [vmem:[#allocation5 + $0x74] ss:$8 sps:$4 sm:$0xff]   ;;  %v84_v26 = vld [vmem:[#allocation2 + $0x8] sm:$0xff]  ;;  %v109_v60 = vlaneseq }
  0x33   :  { %231 = vmatprep.mubr.bf16.mxu0 %v1166_v0  ;;  %v920_v2 = vld [vmem:[#allocation5 + $0x70] ss:$8 sps:$4 sm:$0xff]   ;;  %199 = vmatprep.subr.bf16.mxu0 %v918_v1  ;;  %v921_v3 = vld [vmem:[#allocation5 + $0x64] ss:$8 sps:$4 sm:$0xff]   ;;  %v923_v4 = vld [vmem:[#allocation5 + $0x60] ss:$8 sps:$4 sm:$0xff]  }
  0x34   :  { %200 = vmatpush1.bf16.msra.mxu0 %v920_v2  ;;  %v924_v5 = vld [vmem:[#allocation5 + $0x54] ss:$8 sps:$4 sm:$0xff]   ;;  %v926_v6 = vld [vmem:[#allocation5 + $0x50] ss:$8 sps:$4 sm:$0xff]   ;;  %v927_v7 = vld [vmem:[#allocation5 + $0x44] ss:$8 sps:$4 sm:$0xff]  }
  0x35   :  { %201 = vmatprep.subr.bf16.mxu0 %v921_v3  ;;  %v929_v8 = vld [vmem:[#allocation5 + $0x40] ss:$8 sps:$4 sm:$0xff]   ;;  %v930_v9 = vld [vmem:[#allocation5 + $0x34] ss:$8 sps:$4 sm:$0xff]   ;;  %v944_v11 = vld [vmem:[#allocation7 + $0x70] ss:$8 sps:$4 sm:$0xff]  }
  0x36   :  { %v942_v10 = vld [vmem:[#allocation7 + $0x74] ss:$8 sps:$4 sm:$0xff]   ;;  %v932_v12 = vld [vmem:[#allocation5 + $0x30] ss:$8 sps:$4 sm:$0xff]   ;;  %v945_v13 = vld [vmem:[#allocation7 + $0x64] ss:$8 sps:$4 sm:$0xff]  }
  0x37   :  { %v933_v14 = vld [vmem:[#allocation5 + $0x24] ss:$8 sps:$4 sm:$0xff]   ;;  %476 = vmatprep.subr.bf16.mxu1 %v942_v10  ;;  %v947_v15 = vld [vmem:[#allocation7 + $0x60] ss:$8 sps:$4 sm:$0xff]   ;;  %v948_v16 = vld [vmem:[#allocation7 + $0x54] ss:$8 sps:$4 sm:$0xff]  }
  0x38   :  { %202 = vmatpush1.bf16.msra.mxu0 %v923_v4  ;;  %477 = vmatpush1.bf16.msra.mxu1 %v944_v11  ;;  %v935_v17 = vld [vmem:[#allocation5 + $0x20] ss:$8 sps:$4 sm:$0xff]   ;;  %v936_v18 = vld [vmem:[#allocation5 + $0x14] ss:$8 sps:$4 sm:$0xff]   ;;  %v950_v19 = vld [vmem:[#allocation7 + $0x50] ss:$8 sps:$4 sm:$0xff]  }
  0x39   :  { %203 = vmatprep.subr.bf16.mxu0 %v924_v5  ;;  %478 = vmatprep.subr.bf16.mxu1 %v945_v13  ;;  %v951_v20 = vld [vmem:[#allocation7 + $0x44] ss:$8 sps:$4 sm:$0xff]   ;;  %v938_v21 = vld [vmem:[#allocation5 + $0x10] ss:$8 sps:$4 sm:$0xff]   ;;  %v953_v23 = vld [vmem:[#allocation7 + $0x40] ss:$8 sps:$4 sm:$0xff]  }
  0x3a   :  { %v939_v22 = vld [vmem:[#allocation5 + $0x4] ss:$8 sps:$4 sm:$0xff]   ;;  %v941_v24 = vld [vmem:[#allocation5] ss:$8 sps:$4 sm:$0xff]   ;;  %v83_v25 = vld [vmem:[#allocation2] sm:$0xff]  ;;  %v1232_v61 = vshrl.u32 %v109_v60, 7 }
  0x3b   :  { %v954_v27 = vld [vmem:[#allocation7 + $0x34] ss:$8 sps:$4 sm:$0xff]   ;;  %v956_v28 = vld [vmem:[#allocation7 + $0x30] ss:$8 sps:$4 sm:$0xff]   ;;  %v957_v29 = vld [vmem:[#allocation7 + $0x24] ss:$8 sps:$4 sm:$0xff]   ;;  %v88_v30 = vpack.c.bf16 %v84_v26, %v83_v25 }
  0x3c   :  { %204 = vmatpush1.bf16.msra.mxu0 %v926_v6  ;;  %479 = vmatpush1.bf16.msra.mxu1 %v947_v15  ;;  %v959_v31 = vld [vmem:[#allocation7 + $0x20] ss:$8 sps:$4 sm:$0xff]   ;;  %v960_v32 = vld [vmem:[#allocation7 + $0x14] ss:$8 sps:$4 sm:$0xff]   ;;  %v962_v35 = vld [vmem:[#allocation7 + $0x10] ss:$8 sps:$4 sm:$0xff]  }
  0x3d   :  { %205 = vmatprep.subr.bf16.mxu0 %v927_v7  ;;  %480 = vmatprep.subr.bf16.mxu1 %v948_v16  ;;  %v85_v33 = vld [vmem:[#allocation2 + $0x10] sm:$0xff]  ;;  %v86_v34 = vld [vmem:[#allocation2 + $0x18] sm:$0xff]  ;;  %v87_v40 = vld [vmem:[#allocation2 + $0x20] sm:$0xff]  ;;  %v111_v62 = vsub.s32 0, %v1232_v61 }
  0x3e   :  { %v963_v36 = vld [vmem:[#allocation7 + $0x4] ss:$8 sps:$4 sm:$0xff]   ;;  %v89_v37 = vpack.c.bf16 %v86_v34, %v85_v33  ;;  %v965_v38 = vld [vmem:[#allocation7] ss:$8 sps:$4 sm:$0xff]   ;;  %v966_v39 = vld [vmem:[#allocation7 + $0xf4] ss:$8 sps:$4 sm:$0xff]   ;;  %v90_v43 = vpack.c.bf16 %v87_v40, %v87_v40 }
  0x3f   :  { %v968_v41 = vld [vmem:[#allocation7 + $0xf0] ss:$8 sps:$4 sm:$0xff]   ;;  %v969_v42 = vld [vmem:[#allocation7 + $0xe4] ss:$8 sps:$4 sm:$0xff]   ;;  %v971_v44 = vld [vmem:[#allocation7 + $0xe0] ss:$8 sps:$4 sm:$0xff]  }
  0x40   :  { %206 = vmatpush1.bf16.msra.mxu0 %v929_v8  ;;  %481 = vmatpush1.bf16.msra.mxu1 %v950_v19  ;;  %v972_v45 = vld [vmem:[#allocation7 + $0xd4] ss:$8 sps:$4 sm:$0xff]   ;;  %v974_v46 = vld [vmem:[#allocation7 + $0xd0] ss:$8 sps:$4 sm:$0xff]   ;;  %v975_v47 = vld [vmem:[#allocation7 + $0xc4] ss:$8 sps:$4 sm:$0xff]  }
  0x41   :  { %207 = vmatprep.subr.bf16.mxu0 %v930_v9  ;;  %482 = vmatprep.subr.bf16.mxu1 %v951_v20  ;;  %v977_v48 = vld [vmem:[#allocation7 + $0xc0] ss:$8 sps:$4 sm:$0xff]   ;;  %v978_v49 = vld [vmem:[#allocation7 + $0xb4] ss:$8 sps:$4 sm:$0xff]   ;;  %v980_v50 = vld [vmem:[#allocation7 + $0xb0] ss:$8 sps:$4 sm:$0xff]  }
  0x42   :  { %v981_v51 = vld [vmem:[#allocation7 + $0xa4] ss:$8 sps:$4 sm:$0xff]   ;;  %v983_v52 = vld [vmem:[#allocation7 + $0xa0] ss:$8 sps:$4 sm:$0xff]   ;;  %v984_v53 = vld [vmem:[#allocation7 + $0x94] ss:$8 sps:$4 sm:$0xff]  }
  0x43   :  { %v986_v54 = vld [vmem:[#allocation7 + $0x90] ss:$8 sps:$4 sm:$0xff]   ;;  %v987_v55 = vld [vmem:[#allocation7 + $0x84] ss:$8 sps:$4 sm:$0xff]   ;;  %v989_v56 = vld [vmem:[#allocation7 + $0x80] ss:$8 sps:$4 sm:$0xff]  }
  0x44   :  { %208 = vmatpush1.bf16.msra.mxu0 %v932_v12  ;;  %483 = vmatpush1.bf16.msra.mxu1 %v953_v23  ;;  %v990_v57 = vld [vmem:[#allocation8 + $0x78] sm:$0xff]   ;;  %v992_v59 = vld [vmem:[#allocation8 + $0x70] sm:$0xff]   ;;  %v996_v40 = vld [vmem:[#allocation8 + $0x60] sm:$0xff]  }
  0x45   :  { %209 = vmatprep.subr.bf16.mxu0 %v933_v14  ;;  %484 = vmatprep.subr.bf16.mxu1 %v954_v27  ;;  %v991_v58 = vld [vmem:[#allocation8 + $0x38] sm:$0xff]  }
  0x46   :  { %v107_v63 = vld [vmem:[%s1261_s2] sm:$0x3] }
  0x47   :  { %v112_v2 = vrot.slane %v107_v63, %v111_v62 }
  0x48   :  { %210 = vmatpush1.bf16.msra.mxu0 %v935_v17  ;;  %485 = vmatpush1.bf16.msra.mxu1 %v956_v28 }
  0x49   :  { %211 = vmatprep.subr.bf16.mxu0 %v936_v18  ;;  %486 = vmatprep.subr.bf16.mxu1 %v957_v29 }
  0x4c   :  { %212 = vmatpush1.bf16.msra.mxu0 %v938_v21  ;;  %487 = vmatpush1.bf16.msra.mxu1 %v959_v31 }
  0x4d   :  { %213 = vmatprep.subr.bf16.mxu0 %v939_v22  ;;  %488 = vmatprep.subr.bf16.mxu1 %v960_v32 }
  0x50   :  { %214 = vmatpush1.bf16.msra.mxu0 %v941_v24  ;;  %489 = vmatpush1.bf16.msra.mxu1 %v962_v35 }
  0x51   :  { %490 = vmatprep.subr.bf16.mxu1 %v963_v36  ;;  %874 = vmatprep.subr.bf16.mxu0 %v990_v57 }
  0x53   :  { %232 = vmatmul.mubr.bf16.vlgmr.msra.gmra.mxu0 %v88_v30 }
  0x54   :  { %241 = vmatprep.mubr.bf16.mxu0 %v1166_v0  ;;  %491 = vmatpush1.bf16.msra.mxu1 %v965_v38  ;;  %v994_v38 = vld [vmem:[#allocation8 + $0x68] sm:$0xff]  }
  0x55   :  { %492 = vmatprep.subr.bf16.mxu1 %v966_v39  ;;  %875 = vmatpush3.bf16.msra.mxu0 %v991_v58  ;;  %v995_v39 = vld [vmem:[#allocation8 + $0x28] sm:$0xff]  }
  0x56   :  { %876 = vmatprep.subr.bf16.mxu0 %v992_v59 }
  0x58   :  { %493 = vmatpush2.bf16.msra.mxu1 %v968_v41  ;;  %v997_v41 = vld [vmem:[#allocation8 + $0x20] sm:$0xff]  }
  0x59   :  { %494 = vmatprep.subr.bf16.mxu1 %v969_v42  ;;  %v998_v42 = vld [vmem:[#allocation8 + $0x58] sm:$0xff]  }
  0x5b   :  { %242 = vmatmul.mubr.bf16.gmra.mxu0 %v89_v37  ;;  %v993_v37 = vld [vmem:[#allocation8 + $0x30] sm:$0xff]  }
  0x5c   :  { %251 = vmatprep.mubr.bf16.mxu0 %v1166_v0  ;;  %495 = vmatpush2.bf16.msra.mxu1 %v971_v44  ;;  %v115_v0 = vsub.s32 1, %v1232_v61  ;;  %v1000_v44 = vld [vmem:[#allocation8 + $0x50] sm:$0xff]  }
  0x5d   :  { %496 = vmatprep.subr.bf16.mxu1 %v972_v45  ;;  %877 = vmatpush3.bf16.msra.mxu0 %v993_v37  ;;  %v1001_v45 = vld [vmem:[#allocation8 + $0x10] sm:$0xff]  }
  0x5e   :  { %v116_v4 = vrot.slane %v107_v63, %v115_v0  ;;  %878 = vmatprep.subr.bf16.mxu0 %v994_v38 }
  0x60   :  { %497 = vmatpush2.bf16.msra.mxu1 %v974_v46  ;;  %v1002_v46 = vld [vmem:[#allocation8 + $0x48] sm:$0xff]  }
  0x61   :  { %498 = vmatprep.subr.bf16.mxu1 %v975_v47  ;;  %879 = vmatpush3.bf16.msra.mxu0 %v995_v39  ;;  %v1003_v47 = vld [vmem:[#allocation8 + $0x8] sm:$0xff]  }
  0x62   :  { %880 = vmatprep.subr.bf16.mxu0 %v996_v40 }
  0x63   :  { %252 = vmatmul.mubr.bf16.gmra.mxu0 %v90_v43  ;;  %v999_v43 = vld [vmem:[#allocation8 + $0x18] sm:$0xff]  }
  0x64   :  { %499 = vmatpush2.bf16.msra.mxu1 %v977_v48  ;;  %v1004_v48 = vld [vmem:[#allocation8 + $0x40] sm:$0xff]  }
  0x65   :  { %500 = vmatprep.subr.bf16.mxu1 %v978_v49  ;;  %881 = vmatpush3.bf16.msra.mxu0 %v997_v41  ;;  %v1005_v49 = vld [vmem:[#allocation8] sm:$0xff]  }
  0x66   :  { %882 = vmatprep.subr.bf16.mxu0 %v998_v42 }
  0x68   :  { %501 = vmatpush2.bf16.msra.mxu1 %v980_v50  ;;  %v304_v50 = vld [vmem:[%s1263_s4] sm:$0x3] }
  0x69   :  { %502 = vmatprep.subr.bf16.mxu1 %v981_v51  ;;  %883 = vmatpush3.bf16.msra.mxu0 %v999_v43 }
  0x6a   :  { %884 = vmatprep.subr.bf16.mxu0 %v1000_v44 }
  0x6c   :  { %503 = vmatpush2.bf16.msra.mxu1 %v983_v52  ;;  %v309_v52 = vrot.slane %v304_v50, %v111_v62 }
  0x6d   :  { %504 = vmatprep.subr.bf16.mxu1 %v984_v53  ;;  %885 = vmatpush3.bf16.msra.mxu0 %v1001_v45 }
  0x6e   :  { %886 = vmatprep.subr.bf16.mxu0 %v1002_v46 }
  0x70   :  { %505 = vmatpush2.bf16.msra.mxu1 %v986_v54  ;;  %v313_v54 = vrot.slane %v304_v50, %v115_v0 }
  0x71   :  { %506 = vmatprep.subr.bf16.mxu1 %v987_v55  ;;  %887 = vmatpush3.bf16.msra.mxu0 %v1003_v47 }
  0x72   :  { %888 = vmatprep.subr.bf16.mxu0 %v1004_v48 }
  0x74   :  { %507 = vmatpush2.bf16.msra.mxu1 %v989_v56 }
  0x75   :  { %889 = vmatpush3.bf16.msra.mxu0 %v1005_v49 }
 0x113   :  { %v233_v1 = vpop.f32.mrf.mxu0 }
 0x114   :  { %v234_v7 = vadd.f32 %v233_v1, %v112_v2 }
 0x115   :  { %v235_v3 = vpop.f32.mrf.mxu0 }
 0x116   :  { %v236_v9 = vadd.f32 %v235_v3, %v116_v4 }
 0x117   :  { %v237_v5 = vpop.f32.mrf.mxu0 }
 0x118   :  { %v238_v6 = vadd.f32 %v237_v5, %v112_v2 }
 0x119   :  { %v239_v8 = vpop.f32.mrf.mxu0 }
 0x11a   :  { %v240_v10 = vadd.f32 %v239_v8, %v116_v4  ;;  %v260_v11 = vpack.c.bf16 %v238_v6, %v234_v7 }
 0x11b   :  { %v243_v12 = vpop.f32.mrf.mxu0 }
 0x11c   :  { %v261_v13 = vpack.c.bf16 %v240_v10, %v236_v9  ;;  %v244_v17 = vadd.f32 %v243_v12, %v112_v2 }
 0x11d   :  { %v245_v14 = vpop.f32.mrf.mxu0 }
 0x11e   :  { %1006 = vtanh.bf16 %v261_v13  ;;  %v246_v19 = vadd.f32 %v245_v14, %v116_v4 }
 0x11f   :  { %1008 = vtanh.bf16 %v260_v11  ;;  %v247_v15 = vpop.f32.mrf.mxu0 }
 0x120   :  { %v248_v16 = vadd.f32 %v247_v15, %v112_v2 }
 0x121   :  { %v249_v18 = vpop.f32.mrf.mxu0 }
 0x122   :  { %v250_v20 = vadd.f32 %v249_v18, %v116_v4  ;;  %v262_v21 = vpack.c.bf16 %v248_v16, %v244_v17 }
 0x123   :  { %v253_v22 = vpop.f32.mrf.mxu0 }
 0x124   :  { %v263_v23 = vpack.c.bf16 %v250_v20, %v246_v19  ;;  %v254_v24 = vadd.f32 %v253_v22, %v112_v2 }
 0x125   :  { %v255_v25 = vpop.f32.mrf.mxu0 }
 0x126   :  { %1010 = vtanh.bf16 %v263_v23  ;;  %v256_v26 = vadd.f32 %v255_v25, %v116_v4  ;;  %v264_v29 = vpack.c.bf16 %v254_v24, %v254_v24  ;;  %v857_v25 = vld [vmem:[%s1265_s6] ss:$0 sm:$0xff]  ;;  %s1167_s6 = smov [#allocation10]  }
 0x127   :  { %1012 = vtanh.bf16 %v262_v21  ;;  %v257_v27 = vpop.f32.mrf.mxu0  ;;  %s795_s25 = sshll.u32 %s1167_s6, 4  ;;  %s796_s25 = int_to_ptr.vmem [resolvable:$true] %s795_s25 }
 0x128   :  { %v265_v28 = vpack.c.bf16 %v256_v26, %v256_v26  ;;  %s1130_s26 = scalar_lea.vmem %s796_s25, 640  ;;  %p1135_p7 = scmp.lt.s32.totalorder %s796_s25, %s796_s25 }
 0x129   :  { %v258_v30 = vpop.f32.mrf.mxu0  ;;  %p1131_p6 = scmp.ne.s32.totalorder %s796_s25, %s1130_s26  ;;  %p1136_p8 = scmp.lt.s32.totalorder %s1130_s26, %s1130_s26 }
 0x12a   :  { %1014 = vtanh.bf16 %v265_v28 }
 0x12b   :  { %1016 = vtanh.bf16 %v264_v29  ;;  %p1137_p9 = por %p1136_p8, %p1135_p7 }
 0x12c   :  { %v1007_v31 = vpop.eup %1006 }
 0x12d   :  { %v1009_v32 = vpop.eup %1008  ;;  %508 = vmatprep.mubr.bf16.mxu1 %v1007_v31  ;;  %p1138_p10 = pnand %p1137_p9, %p1131_p6 }
 0x12e   :  { %509 = vmatmul.mubr.bf16.vlgmr.msra.gmra.mxu1 %v1009_v32 }
 0x134   :  { %v1011_v33 = vpop.eup %1010 }
 0x135   :  { %v1013_v34 = vpop.eup %1012  ;;  %518 = vmatprep.mubr.bf16.mxu1 %v1011_v33 }
 0x136   :  { %519 = vmatmul.mubr.bf16.gmra.mxu1 %v1013_v34 }
 0x138   :  { %v1015_v35 = vpop.eup %1014 }
 0x139   :  { %528 = vmatprep.mubr.bf16.mxu1 %v1015_v35  ;;  %v1017_v36 = vpop.eup %1016 }
 0x13e   :  { %529 = vmatmul.mubr.bf16.gmra.mxu1 %v1017_v36 }
 0x1ee   :  { %v510_v51 = vpop.f32.mrf.mxu1 }
 0x1ef   :  { %v511_v57 = vadd.f32 %v510_v51, %v309_v52 }
 0x1f0   :  { %v512_v53 = vpop.f32.mrf.mxu1 }
 0x1f1   :  { %v513_v59 = vadd.f32 %v512_v53, %v313_v54 }
 0x1f2   :  { %v514_v55 = vpop.f32.mrf.mxu1 }
 0x1f3   :  { %v515_v56 = vadd.f32 %v514_v55, %v309_v52 }
 0x1f4   :  { %v516_v58 = vpop.f32.mrf.mxu1 }
 0x1f5   :  { %v517_v60 = vadd.f32 %v516_v58, %v313_v54  ;;  %v537_v63 = vpack.c.bf16 %v515_v56, %v511_v57 }
 0x1f6   :  { %v520_v1 = vpop.f32.mrf.mxu1 }
 0x1f7   :  { %v538_v2 = vpack.c.bf16 %v517_v60, %v513_v59  ;;  %v521_v6 = vadd.f32 %v520_v1, %v309_v52 }
 0x1f8   :  { %v522_v3 = vpop.f32.mrf.mxu1 }
 0x1f9   :  { %1018 = vtanh.bf16 %v538_v2  ;;  %v523_v7 = vadd.f32 %v522_v3, %v313_v54 }
 0x1fa   :  { %1020 = vtanh.bf16 %v537_v63  ;;  %v524_v4 = vpop.f32.mrf.mxu1 }
 0x1fb   :  { %v525_v5 = vadd.f32 %v524_v4, %v309_v52 }
 0x1fc   :  { %v526_v62 = vpop.f32.mrf.mxu1 }
 0x1fd   :  { %v527_v8 = vadd.f32 %v526_v62, %v313_v54  ;;  %v539_v61 = vpack.c.bf16 %v525_v5, %v521_v6 }
 0x1fe   :  { %v530_v0 = vpop.f32.mrf.mxu1 }
 0x1ff   :  { %v540_v9 = vpack.c.bf16 %v527_v8, %v523_v7  ;;  %v531_v12 = vadd.f32 %v530_v0, %v309_v52 }
 0x200   :  { %v532_v10 = vpop.f32.mrf.mxu1 }
 0x201   :  { %1022 = vtanh.bf16 %v540_v9  ;;  %v533_v11 = vadd.f32 %v532_v10, %v313_v54  ;;  %v541_v16 = vpack.c.bf16 %v531_v12, %v531_v12 }
 0x202   :  { %1024 = vtanh.bf16 %v539_v61  ;;  %v534_v13 = vpop.f32.mrf.mxu1 }
 0x203   :  { %v542_v14 = vpack.c.bf16 %v533_v11, %v533_v11 }
 0x204   :  { %v535_v15 = vpop.f32.mrf.mxu1 }
 0x205   :  { %1026 = vtanh.bf16 %v542_v14 }
 0x206   :  { %1028 = vtanh.bf16 %v541_v16 }
 0x207   :  { %v1019_v17 = vpop.eup %1018 }
 0x208   :  { %v1021_v18 = vpop.eup %1020  ;;  %716 = vmatprep.mubr.bf16.mxu0 %v1019_v17 }
 0x209   :  { %717 = vmatmul.mubr.bf16.vlgmr.msra.gmra.mxu0 %v1021_v18 }
 0x20f   :  { %v1023_v19 = vpop.eup %1022 }
 0x210   :  { %v1025_v20 = vpop.eup %1024  ;;  %724 = vmatprep.mubr.bf16.mxu0 %v1023_v19 }
 0x211   :  { %725 = vmatmul.mubr.bf16.gmra.mxu0 %v1025_v20 }
 0x213   :  { %v1027_v21 = vpop.eup %1026 }
 0x214   :  { %732 = vmatprep.mubr.bf16.mxu0 %v1027_v21  ;;  %v1029_v22 = vpop.eup %1028 }
 0x219   :  { %733 = vmatmul.mubr.bf16.gmra.mxu0 %v1029_v22 }
 0x2c9   :  { %v890_v23 = vpop.f32.mrf.mxu0 }
 0x2cb   :  { %v891_v24 = vpop.f32.mrf.mxu0 }
 0x2cc   :  { %v892_v26 = vadd.f32 %v891_v24, %v890_v23 }
 0x2cd   :  { %v893_v27 = vpop.f32.mrf.mxu0 }
 0x2ce   :  { %v719_v28 = vadd.f32 %v892_v26, %v857_v25 }
 0x2cf   :  { %v894_v29 = vpop.f32.mrf.mxu0 }
 0x2d0   :  { %v895_v30 = vadd.f32 %v894_v29, %v893_v27  ;;  %740 = vmax.xlane.f32.xlu0 %v719_v28 }
 0x2d1   :  { %v896_v31 = vpop.f32.mrf.mxu0 }
 0x2d2   :  { %v722_v32 = vadd.f32 %v895_v30, %v857_v25 }
 0x2d3   :  { %v897_v33 = vpop.f32.mrf.mxu0 }
 0x2d4   :  { %v898_v34 = vadd.f32 %v897_v33, %v896_v31  ;;  %742 = vmax.xlane.f32.xlu0 %v722_v32 }
 0x2d5   :  { %v899_v35 = vpop.f32.mrf.mxu0 }
 0x2d6   :  { %v727_v36 = vadd.f32 %v898_v34, %v857_v25 }
 0x2d7   :  { %v900_v37 = vpop.f32.mrf.mxu0 }
 0x2d8   :  { %v901_v38 = vadd.f32 %v900_v37, %v899_v35  ;;  %744 = vmax.xlane.f32.xlu1 %v727_v36 }
 0x2d9   :  { %v902_v39 = vpop.f32.mrf.mxu0 }
 0x2da   :  { %v730_v40 = vadd.f32 %v901_v38, %v857_v25 }
 0x2db   :  { %v903_v41 = vpop.f32.mrf.mxu0 }
 0x2dc   :  { %v904_v42 = vadd.f32 %v903_v41, %v902_v39  ;;  %746 = vmax.xlane.f32.xlu1 %v730_v40 }
 0x2dd   :  { %v905_v43 = vpop.f32.mrf.mxu0 }
 0x2de   :  { %v735_v44 = vadd.f32 %v904_v42, %v857_v25 }
 0x2df   :  { %v906_v45 = vpop.f32.mrf.mxu0 }
 0x2e0   :  { %748 = vmax.xlane.f32.xlu0 %v735_v44 }
 0x359   :  { %v741_v46 = vpop.xlane.xlu0 %740 }
 0x35a   :  { %v750_v47 = vsub.f32 %v719_v28, %v741_v46 }
 0x35c   :  { %v755_v48 = vmul.f32 1.442695, %v750_v47 }
 0x35d   :  { %v743_v49 = vpop.xlane.xlu0 %742 }
 0x35e   :  { %1030 = vpow2.f32 %v755_v48  ;;  %v751_v50 = vsub.f32 %v722_v32, %v743_v49 }
 0x360   :  { %v757_v51 = vmul.f32 1.442695, %v751_v50 }
 0x361   :  { %v745_v52 = vpop.xlane.xlu1 %744 }
 0x362   :  { %1032 = vpow2.f32 %v757_v51  ;;  %v752_v53 = vsub.f32 %v727_v36, %v745_v52 }
 0x364   :  { %v759_v54 = vmul.f32 1.442695, %v752_v53 }
 0x365   :  { %v747_v55 = vpop.xlane.xlu1 %746 }
 0x366   :  { %1034 = vpow2.f32 %v759_v54  ;;  %v753_v56 = vsub.f32 %v730_v40, %v747_v55 }
 0x368   :  { %v761_v57 = vmul.f32 1.442695, %v753_v56 }
 0x369   :  { %v749_v58 = vpop.xlane.xlu0 %748 }
 0x36a   :  { %1036 = vpow2.f32 %v761_v57  ;;  %v754_v59 = vsub.f32 %v735_v44, %v749_v58 }
 0x36b   :  { %v1031_v60 = vpop.eup %1030 }
 0x36c   :  { %v763_v63 = vmul.f32 1.442695, %v754_v59  ;;  %765 = vadd.xlane.f32.xlu1 %v1031_v60 }
 0x36e   :  { %1038 = vpow2.f32 %v763_v63 }
 0x36f   :  { %v1033_v1 = vpop.eup %1032 }
 0x370   :  { %767 = vadd.xlane.f32.xlu0 %v1033_v1 }
 0x373   :  { %v1035_v2 = vpop.eup %1034 }
 0x374   :  { %769 = vadd.xlane.f32.xlu1 %v1035_v2 }
 0x377   :  { %v1037_v3 = vpop.eup %1036 }
 0x378   :  { %771 = vadd.xlane.f32.xlu0 %v1037_v3 }
 0x37b   :  { %v1039_v4 = vpop.eup %1038 }
 0x37c   :  { %773 = vadd.xlane.f32.xlu1 %v1039_v4 }
 0x3f5   :  { %v766_v5 = vpop.xlane.xlu1 %765 }
 0x3f6   :  { %1040 = vrcp.f32 %v766_v5 }
 0x3f9   :  { %v768_v6 = vpop.xlane.xlu0 %767 }
 0x3fa   :  { %1042 = vrcp.f32 %v768_v6 }
 0x3fd   :  { %v770_v62 = vpop.xlane.xlu1 %769 }
 0x3fe   :  { %1044 = vrcp.f32 %v770_v62 }
 0x401   :  { %v772_v7 = vpop.xlane.xlu0 %771 }
 0x402   :  { %1046 = vrcp.f32 %v772_v7 }
 0x403   :  { %v1041_v8 = vpop.eup %1040 }
 0x404   :  { %v780_v61 = vmul.f32 %v1041_v8, %v1031_v60 }
 0x405   :  { %v774_v0 = vpop.xlane.xlu1 %773 }
 0x406   :  { %1048 = vrcp.f32 %v774_v0  ;;  %785 = vst [vmem:[#allocation10] sm:$0xff] %v780_v61 }
 0x407   :  { %v1043_v9 = vpop.eup %1042 }
 0x408   :  { %v781_v10 = vmul.f32 %v1043_v9, %v1033_v1 }
 0x40a   :  { %786 = vst [vmem:[#allocation10 + $0x8] sm:$0xff] %v781_v10 }
 0x40b   :  { %v1045_v11 = vpop.eup %1044 }
 0x40c   :  { %v782_v12 = vmul.f32 %v1045_v11, %v1035_v2 }
 0x40e   :  { %787 = vst [vmem:[#allocation10 + $0x10] sm:$0xff] %v782_v12 }
 0x40f   :  { %v1047_v13 = vpop.eup %1046 }
 0x410   :  { %v783_v14 = vmul.f32 %v1047_v13, %v1037_v3 }
 0x412   :  { %788 = vst [vmem:[#allocation10 + $0x18] sm:$0xff] %v783_v14 }
 0x413   :  { %v1049_v15 = vpop.eup %1048 }
 0x414   :  { %v784_v16 = vmul.f32 %v1049_v15, %v1039_v4 }
 0x416   :  { %789 = vst [vmem:[#allocation10 + $0x20] sm:$0xff] %v784_v16 }
 0x417   :  { %1141 = shalt.err (!%p1138_p10)
}
 0x418   :  { %801 = dma.vmem_to_hbm [thread:$0]  %s796_s25, 640, %s1266_s7, [#allocation4], %s1160_s29, %s1160_s29, %s1161_s30  }
 0x419   :  { %1156 = dma.done.wait [#allocation4], 640  }
 0x41a   :  { %1157 = vsyncadd [#allocation4], 4294966656 }
 0x41b   :  { %805 = vsyncpa [#allocation3], 1 }
 0x41c   :  { %806 = vsyncpa [#allocation6], 1 }
 0x41d   :  { %807 = vsyncpa [#allocation9], 1 }
 0x41e   :  { %808 = vsyncpa [#allocation4], 1 }

</bundles_post_ra>
